<compile_context>
chip_gen: v5e
topology: v5e:2x2
jax: 0.10.0
libtpu: 0.0.40
codegen_flags: <defaults>
</compile_context>

<pallas_src>
import jax
import jax.numpy as jnp
from jax.experimental import pallas as pl
from jax.experimental.pallas import tpu as pltpu


def residual_ff_kernel(x_ref, w1_ref, b1_ref, w2_ref, b2_ref, o_ref):
    """out = GELU(x @ W1 + b1) @ W2 + b2 + x   (residual add fused)."""
    x = x_ref[...]                              # f32 (tm, Hp), kept for residual
    xb = x.astype(jnp.bfloat16)                 # bf16 MXU input
    h = jnp.dot(xb, w1_ref[...], preferred_element_type=jnp.float32)
    h = h + b1_ref[...]                         # f32 bias
    # TODO(synk): PyTorch nn.GELU() defaults to the exact erf form; the tanh
    # approximation is used here for the guaranteed EUP lowering path.
    h = jax.nn.gelu(h, approximate=True)        # f32 on VPU/EUP
    y = jnp.dot(h.astype(jnp.bfloat16), w2_ref[...],
                preferred_element_type=jnp.float32)
    y = y + b2_ref[...]
    o_ref[...] = (y + x).astype(o_ref.dtype)    # the ResidualAdd: fn(x) + x


def _round_up(a, b):
    return (a + b - 1) // b * b


def residual_add_ff(x, w1, b1, w2, b2, *, tm=256):
    """x: (B, S, H).  w1: (H, HID), b1: (1, HID), w2: (HID, H), b2: (1, H)."""
    B, S, H = x.shape
    HID = w1.shape[1]
    M = B * S

    # Lane-dense padding of the hidden dims (exact: zero pad contributes 0).
    Hp = _round_up(H, 128)
    HIDp = _round_up(HID, 128)

    # Row tile: big for MXU utilization, shrunk for tiny inputs, ragged tail
    # handled by zero-padding M (padded rows are discarded on the way out).
    tm_eff = min(tm, _round_up(M, 8))
    Mp = _round_up(M, tm_eff)

    x2 = jnp.pad(x.reshape(M, H).astype(jnp.float32),
                 ((0, Mp - M), (0, Hp - H)))
    w1p = jnp.pad(w1, ((0, Hp - H), (0, HIDp - HID))).astype(jnp.bfloat16)
    b1p = jnp.pad(b1.reshape(1, HID), ((0, 0), (0, HIDp - HID))).astype(jnp.float32)
    w2p = jnp.pad(w2, ((0, HIDp - HID), (0, Hp - H))).astype(jnp.bfloat16)
    b2p = jnp.pad(b2.reshape(1, H), ((0, 0), (0, Hp - H))).astype(jnp.float32)

    # Explicit VMEM budget: 2x double-buffered x/out tiles, single-buffered
    # bf16 weights, biases, intermediate h, plus headroom.
    bytes_tiles = 2 * (tm_eff * Hp * 4) * 2                 # x + out, 2 buffers each
    bytes_w = Hp * HIDp * 2 + HIDp * Hp * 2                 # bf16, single buffer
    bytes_b = (HIDp + Hp) * 4 * 2
    bytes_h = tm_eff * HIDp * 4 * 2                         # intermediate + slack
    vmem_limit = min(max(bytes_tiles + bytes_w + bytes_b + bytes_h + (8 << 20),
                         32 << 20), 64 << 20)

    cost = pl.CostEstimate(
        flops=4 * Mp * Hp * HIDp,                           # two matmuls
        transcendentals=Mp * HIDp,                          # tanh in GELU
        bytes_accessed=(Mp * Hp * 4) * 2 + bytes_w + (HIDp + Hp) * 4,
    )

    out = pl.pallas_call(
        residual_ff_kernel,
        out_shape=jax.ShapeDtypeStruct((Mp, Hp), jnp.float32),
        grid_spec=pltpu.PrefetchScalarGridSpec(
            num_scalar_prefetch=0,
            grid=(Mp // tm_eff,),
            in_specs=[
                pl.BlockSpec((tm_eff, Hp), lambda i: (i, 0)),        # x rows
                pl.BlockSpec((Hp, HIDp), lambda i: (0, 0),
                             pipeline_mode=pl.Buffered(1)),          # W1 resident
                pl.BlockSpec((1, HIDp), lambda i: (0, 0)),           # b1
                pl.BlockSpec((HIDp, Hp), lambda i: (0, 0),
                             pipeline_mode=pl.Buffered(1)),          # W2 resident
                pl.BlockSpec((1, Hp), lambda i: (0, 0)),             # b2
            ],
            out_specs=pl.BlockSpec((tm_eff, Hp), lambda i: (i, 0)),
        ),
        compiler_params=pltpu.CompilerParams(
            dimension_semantics=("parallel",),
            vmem_limit_bytes=vmem_limit,
        ),
        cost_estimate=cost,
        input_output_aliases={0: 0},           # padded x reuses the out buffer
    )(x2, w1p, b1p, w2p, b2p)

    return out[:M, :H].reshape(B, S, H).astype(x.dtype)


def residual_add_ff_ref(x, w1, b1, w2, b2):
    """Pure-JAX reference with matching numerics (bf16 MXU inputs, f32 acc)."""
    xb = x.astype(jnp.bfloat16)
    h = jnp.dot(xb, w1.astype(jnp.bfloat16),
                preferred_element_type=jnp.float32) + b1[0]
    h = jax.nn.gelu(h, approximate=True)
    y = jnp.dot(h.astype(jnp.bfloat16), w2.astype(jnp.bfloat16),
                preferred_element_type=jnp.float32) + b2[0]
    return y + x


if __name__ == "__main__":
    B, S, H = 2, 8, 32           # small shapes implied by the transformer use
    EXP = 4                      # feed-forward expansion
    HID = H * EXP                # 128

    key = jax.random.PRNGKey(0)
    k_x, k_w1, k_b1, k_w2, k_b2 = jax.random.split(key, 5)

    x = jax.random.normal(k_x, (B, S, H), dtype=jnp.float32)
    w1 = jax.random.normal(k_w1, (H, HID), dtype=jnp.float32) * (1.0 / H ** 0.5)
    b1 = jax.random.normal(k_b1, (1, HID), dtype=jnp.float32) * 0.01
    w2 = jax.random.normal(k_w2, (HID, H), dtype=jnp.float32) * (1.0 / HID ** 0.5)
    b2 = jax.random.normal(k_b2, (1, H), dtype=jnp.float32) * 0.01

    out = residual_add_ff(x, w1, b1, w2, b2)
    out = jax.block_until_ready(out)

    ref = residual_add_ff_ref(x, w1, b1, w2, b2)
    assert out.shape == (B, S, H)
    assert jnp.allclose(out, ref, atol=2e-3, rtol=2e-3)
    print("KERNEL_OK")
</pallas_src>

<mosaic_0001>
module attributes {stable_mosaic.version = 11 : i64} {
  func.func @residual_ff_kernel(%arg0: i32, %arg1: memref<16x128xf32, #tpu.memory_space<vmem>>, %arg2: memref<128x128xbf16, #tpu.memory_space<vmem>>, %arg3: memref<1x128xf32, #tpu.memory_space<vmem>>, %arg4: memref<128x128xbf16, #tpu.memory_space<vmem>>, %arg5: memref<1x128xf32, #tpu.memory_space<vmem>>, %arg6: memref<16x128xf32, #tpu.memory_space<vmem>>) attributes {dimension_semantics = [#tpu.dimension_semantics<parallel>], iteration_bounds = array<i64: 1>, scalar_prefetch = 0 : i64, scratch_operands = 0 : i64, tpu.core_type = #tpu.core_type<tc>, window_params = [{transform_indices = @transform_0, window_bounds = array<i64: 16, 128>}, {pipeline_mode = #tpu.pipeline_mode<synchronous>, transform_indices = @transform_1, window_bounds = array<i64: 128, 128>}, {pipeline_mode = #tpu.pipeline_mode<synchronous>, transform_indices = @transform_2, window_bounds = array<i64: 1, 128>}, {pipeline_mode = #tpu.pipeline_mode<synchronous>, transform_indices = @transform_3, window_bounds = array<i64: 128, 128>}, {pipeline_mode = #tpu.pipeline_mode<synchronous>, transform_indices = @transform_4, window_bounds = array<i64: 1, 128>}, {transform_indices = @transform_5, window_bounds = array<i64: 16, 128>}]} {
    %c0 = arith.constant 0 : index
    %c0_0 = arith.constant 0 : index
    %0 = vector.load %arg1[%c0, %c0_0] : memref<16x128xf32, #tpu.memory_space<vmem>>, vector<16x128xf32>
    %1 = arith.truncf %0 : vector<16x128xf32> to vector<16x128xbf16>
    %c0_1 = arith.constant 0 : index
    %c0_2 = arith.constant 0 : index
    %2 = vector.load %arg2[%c0_1, %c0_2] : memref<128x128xbf16, #tpu.memory_space<vmem>>, vector<128x128xbf16>
    %cst = arith.constant dense<0.000000e+00> : vector<16x128xf32>
    %3 = tpu.matmul %1, %2, %cst {dimension_numbers = #tpu.dot_dimension_numbers<[1], [0], [0], [1], [0, 0, 1, 1], [], []>} : vector<16x128xbf16>, vector<128x128xbf16>, vector<16x128xf32> -> vector<16x128xf32>
    %c0_3 = arith.constant 0 : index
    %c0_4 = arith.constant 0 : index
    %4 = vector.load %arg3[%c0_3, %c0_4] : memref<1x128xf32, #tpu.memory_space<vmem>>, vector<1x128xf32>
    %5 = vector.broadcast %4 : vector<1x128xf32> to vector<16x128xf32>
    %6 = arith.addf %3, %5 : vector<16x128xf32>
    %7 = arith.mulf %6, %6 : vector<16x128xf32>
    %8 = arith.mulf %6, %7 : vector<16x128xf32>
    %cst_5 = arith.constant 4.471500e-02 : f32
    %9 = vector.broadcast %cst_5 : f32 to vector<16x128xf32>
    %10 = arith.mulf %9, %8 : vector<16x128xf32>
    %11 = arith.addf %6, %10 : vector<16x128xf32>
    %cst_6 = arith.constant 0.797884583 : f32
    %12 = vector.broadcast %cst_6 : f32 to vector<16x128xf32>
    %13 = arith.mulf %12, %11 : vector<16x128xf32>
    %14 = math.tanh %13 : vector<16x128xf32>
    %cst_7 = arith.constant 1.000000e+00 : f32
    %15 = vector.broadcast %cst_7 : f32 to vector<16x128xf32>
    %16 = arith.addf %15, %14 : vector<16x128xf32>
    %cst_8 = arith.constant 5.000000e-01 : f32
    %17 = vector.broadcast %cst_8 : f32 to vector<16x128xf32>
    %18 = arith.mulf %17, %16 : vector<16x128xf32>
    %19 = arith.mulf %6, %18 : vector<16x128xf32>
    %20 = arith.truncf %19 : vector<16x128xf32> to vector<16x128xbf16>
    %c0_9 = arith.constant 0 : index
    %c0_10 = arith.constant 0 : index
    %21 = vector.load %arg4[%c0_9, %c0_10] : memref<128x128xbf16, #tpu.memory_space<vmem>>, vector<128x128xbf16>
    %cst_11 = arith.constant dense<0.000000e+00> : vector<16x128xf32>
    %22 = tpu.matmul %20, %21, %cst_11 {dimension_numbers = #tpu.dot_dimension_numbers<[1], [0], [0], [1], [0, 0, 1, 1], [], []>} : vector<16x128xbf16>, vector<128x128xbf16>, vector<16x128xf32> -> vector<16x128xf32>
    %c0_12 = arith.constant 0 : index
    %c0_13 = arith.constant 0 : index
    %23 = vector.load %arg5[%c0_12, %c0_13] : memref<1x128xf32, #tpu.memory_space<vmem>>, vector<1x128xf32>
    %24 = vector.broadcast %23 : vector<1x128xf32> to vector<16x128xf32>
    %25 = arith.addf %22, %24 : vector<16x128xf32>
    %26 = arith.addf %25, %0 : vector<16x128xf32>
    %c0_14 = arith.constant 0 : index
    %c0_15 = arith.constant 0 : index
    %27 = vector.load %arg6[%c0_14, %c0_15] : memref<16x128xf32, #tpu.memory_space<vmem>>, vector<16x128xf32>
    tpu.vector_store %arg6[%c0_14, %c0_15], %26 {strides = array<i32>} : memref<16x128xf32, #tpu.memory_space<vmem>>, vector<16x128xf32>,
    return
  }
  func.func @transform_0(%arg0: i32) -> (i32, i32) {
    %c0_i32 = arith.constant 0 : i32
    %c0_i32_0 = arith.constant 0 : i32
    return %arg0, %c0_i32 : i32, i32
  }
  func.func @transform_1(%arg0: i32) -> (i32, i32) {
    %c0_i32 = arith.constant 0 : i32
    %c0_i32_0 = arith.constant 0 : i32
    %c0_i32_1 = arith.constant 0 : i32
    return %c0_i32, %c0_i32_0 : i32, i32
  }
  func.func @transform_2(%arg0: i32) -> (i32, i32) {
    %c0_i32 = arith.constant 0 : i32
    %c0_i32_0 = arith.constant 0 : i32
    %c0_i32_1 = arith.constant 0 : i32
    return %c0_i32, %c0_i32_0 : i32, i32
  }
  func.func @transform_3(%arg0: i32) -> (i32, i32) {
    %c0_i32 = arith.constant 0 : i32
    %c0_i32_0 = arith.constant 0 : i32
    %c0_i32_1 = arith.constant 0 : i32
    return %c0_i32, %c0_i32_0 : i32, i32
  }
  func.func @transform_4(%arg0: i32) -> (i32, i32) {
    %c0_i32 = arith.constant 0 : i32
    %c0_i32_0 = arith.constant 0 : i32
    %c0_i32_1 = arith.constant 0 : i32
    return %c0_i32, %c0_i32_0 : i32, i32
  }
  func.func @transform_5(%arg0: i32) -> (i32, i32) {
    %c0_i32 = arith.constant 0 : i32
    %c0_i32_0 = arith.constant 0 : i32
    return %arg0, %c0_i32 : i32, i32
  }
}

</mosaic_0001>

<bundles_post_ra>
// kernel: tpu_custom_call.1
= control target key start
LH: loop header
LB: loop body
LE: loop exit
PB: predicated region body
PF: predicated region fallthrough
CT: control target
= control target key end

     0   :  { %10 = vsyncpa [#allocation3], 0  ;;  %s536_s0 = inlined_call_operand.hbm [shape: f32[16,128], index: 0, kind: input, shape index: {}, may-alias: {0,5}]   ;;  %s537_s1 = inlined_call_operand.hbm [shape: bf16[128,128], index: 1, kind: input, shape index: {}]   ;;  %s538_s2 = inlined_call_operand.vmem [shape: f32[1,128], index: 2, kind: input, shape index: {}]   ;;  %s539_s3 = inlined_call_operand.hbm [shape: bf16[128,128], index: 3, kind: input, shape index: {}]   ;;  %s540_s4 = inlined_call_operand.vmem [shape: f32[1,128], index: 4, kind: input, shape index: {}]   ;;  %s541_s5 = inlined_call_operand.hbm [shape: f32[16,128], index: 5, kind: output, shape index: {}, may-alias: {0,5}]  }
   0x1   :  { %11 = vsyncpa [#allocation6], 0  ;;  %s30_s20 = sshll.u32 %s537_s1, 4  ;;  %s31_s20 = int_to_ptr.hbm [resolvable:$true] %s30_s20 }
   0x2   :  { %12 = vsyncpa [#allocation4], 0  ;;  %s474_s21 = smov [#allocation5]   ;;  %s17_s25 = sshll.u32 %s536_s0, 4  ;;  %s18_s25 = int_to_ptr.hbm [resolvable:$true] %s17_s25 }
   0x3   :  { %s32_s22 = sshll.u32 %s474_s21, 4  ;;  %s475_s26 = smov 64   ;;  %s33_s22 = int_to_ptr.vmem [resolvable:$true] %s32_s22 }
   0x4   :  { %s476_s27 = smov 4   ;;  %s477_s28 = smov [#allocation2]  }
   0x5   :  { %38 = dma.hbm_to_vmem [thread:$0]  %s31_s20, 1024, %s33_s22, [#allocation6], %s475_s26, %s475_s26, %s476_s27  }
   0x6   :  { %s19_s29 = sshll.u32 %s477_s28, 4  ;;  %s478_s30 = smov 128   ;;  %s20_s29 = int_to_ptr.vmem [resolvable:$true] %s19_s29 }
   0x7   :  { %s479_s6 = smov 8   ;;  %s45_s8 = sshll.u32 %s539_s3, 4  ;;  %s46_s8 = int_to_ptr.hbm [resolvable:$true] %s45_s8 }
   0x8   :  { %25 = dma.hbm_to_vmem [thread:$0]  %s18_s25, 256, %s20_s29, [#allocation3], %s478_s30, %s478_s30, %s479_s6  }
   0x9   :  { %s480_s9 = smov [#allocation7]  }
   0xa   :  { %s47_s0 = sshll.u32 %s480_s9, 4  ;;  %s48_s0 = int_to_ptr.vmem [resolvable:$true] %s47_s0 }
   0xb   :  { %53 = dma.hbm_to_vmem [thread:$0]  %s46_s8, 1024, %s48_s0, [#allocation6], %s475_s26, %s475_s26, %s476_s27  }
   0xc   :  { %468 = dma.done.wait [#allocation3], 256  }
   0xd   :  { %469 = vsyncadd [#allocation3], 4294967040 }
   0xe   :  { %470 = dma.done.wait [#allocation6], 2048  }
   0xf   :  { %471 = vsyncadd [#allocation6], 4294965248  ;;  %v349_v0 = vld [vmem:[#allocation5 + $0x38] sm:$0xff]  ;;  %v348_v1 = vld [vmem:[#allocation5 + $0x30] sm:$0xff]  ;;  %s481_s12 = smov [#allocation8]   ;;  %s264_s16 = sshll.u32 %s541_s5, 4  ;;  %s265_s16 = int_to_ptr.hbm [resolvable:$true] %s264_s16 }
  0x10   :  { %139 = vmatpush.bf16.msra.mxu0 %v349_v0  ;;  %v347_v2 = vld [vmem:[#allocation5 + $0x28] sm:$0xff]  ;;  %v346_v3 = vld [vmem:[#allocation5 + $0x20] sm:$0xff]  ;;  %v345_v4 = vld [vmem:[#allocation5 + $0x18] sm:$0xff]  ;;  %s262_s13 = sshll.u32 %s481_s12, 4  ;;  %s263_s13 = int_to_ptr.vmem [resolvable:$true] %s262_s13 }
  0x11   :  { %v344_v5 = vld [vmem:[#allocation5 + $0x10] sm:$0xff]  ;;  %v343_v6 = vld [vmem:[#allocation5 + $0x8] sm:$0xff]  ;;  %v342_v7 = vld [vmem:[#allocation5] sm:$0xff] }
  0x12   :  { %v68_v8 = vld [vmem:[#allocation2] sm:$0xff]  ;;  %v69_v9 = vld [vmem:[#allocation2 + $0x8] sm:$0xff]  ;;  %v355_v13 = vld [vmem:[#allocation7 + $0x28] sm:$0xff] }
  0x13   :  { %v70_v10 = vpack.c.bf16 %v69_v9, %v68_v8  ;;  %v357_v11 = vld [vmem:[#allocation7 + $0x38] sm:$0xff]  ;;  %v356_v12 = vld [vmem:[#allocation7 + $0x30] sm:$0xff]  ;;  %v354_v14 = vld [vmem:[#allocation7 + $0x20] sm:$0xff] }
  0x14   :  { %140 = vmatpush.bf16.msra.mxu0 %v348_v1  ;;  %240 = vmatpush.bf16.msra.mxu1 %v357_v11  ;;  %v353_v15 = vld [vmem:[#allocation7 + $0x18] sm:$0xff]  ;;  %v352_v16 = vld [vmem:[#allocation7 + $0x10] sm:$0xff]  ;;  %v351_v17 = vld [vmem:[#allocation7 + $0x8] sm:$0xff] }
  0x15   :  { %v366_v18 = vld [vmem:[%s538_s2] ss:$0 sm:$0xff]  ;;  %v350_v19 = vld [vmem:[#allocation7] sm:$0xff] }
  0x16   :  { %v367_v43 = vld [vmem:[%s540_s4] ss:$0 sm:$0xff] }
  0x18   :  { %141 = vmatpush.bf16.msra.mxu0 %v347_v2  ;;  %241 = vmatpush.bf16.msra.mxu1 %v356_v12 }
  0x1c   :  { %142 = vmatpush.bf16.msra.mxu0 %v346_v3  ;;  %242 = vmatpush.bf16.msra.mxu1 %v355_v13 }
  0x20   :  { %143 = vmatpush.bf16.msra.mxu0 %v345_v4  ;;  %243 = vmatpush.bf16.msra.mxu1 %v354_v14 }
  0x24   :  { %144 = vmatpush.bf16.msra.mxu0 %v344_v5  ;;  %244 = vmatpush.bf16.msra.mxu1 %v353_v15 }
  0x28   :  { %145 = vmatpush.bf16.msra.mxu0 %v343_v6  ;;  %245 = vmatpush.bf16.msra.mxu1 %v352_v16 }
  0x2c   :  { %146 = vmatpush.bf16.msra.mxu0 %v342_v7  ;;  %246 = vmatpush.bf16.msra.mxu1 %v351_v17 }
  0x2f   :  { %147 = vmatmul.bf16.vlgmr.msra.gmra.mxu0 %v70_v10 }
  0x30   :  { %247 = vmatpush.bf16.msra.mxu1 %v350_v19 }
  0xac   :  { %v148_v20 = vpop.f32.mrf.mxu0 }
  0xad   :  { %v149_v21 = vadd.f32 %v366_v18, %v148_v20 }
  0xaf   :  { %v153_v22 = vmul.f32 %v149_v21, %v149_v21 }
  0xb1   :  { %v155_v23 = vmul.f32 %v153_v22, %v149_v21 }
  0xb3   :  { %v157_v24 = vmul.f32 0.044715, %v155_v23 }
  0xb4   :  { %v150_v25 = vpop.f32.mrf.mxu0 }
  0xb5   :  { %v159_v26 = vadd.f32 %v157_v24, %v149_v21  ;;  %v151_v27 = vadd.f32 %v366_v18, %v150_v25 }
  0xb7   :  { %v154_v28 = vmul.f32 %v151_v27, %v151_v27  ;;  %v161_v29 = vmul.f32 0.7978846, %v159_v26 }
  0xb9   :  { %v156_v30 = vmul.f32 %v154_v28, %v151_v27  ;;  %368 = vtanh.f32 %v161_v29 }
  0xbb   :  { %v158_v31 = vmul.f32 0.044715, %v156_v30 }
  0xbd   :  { %v160_v32 = vadd.f32 %v158_v31, %v151_v27 }
  0xbf   :  { %v162_v33 = vmul.f32 0.7978846, %v160_v32  ;;  %v369_v34 = vpop.eup %368 }
  0xc0   :  { %v165_v35 = vadd.f32 1.0, %v369_v34 }
  0xc1   :  { %370 = vtanh.f32 %v162_v33 }
  0xc2   :  { %v167_v38 = vmul.f32 0.5, %v165_v35 }
  0xc4   :  { %v169_v40 = vmul.f32 %v167_v38, %v149_v21 }
  0xc7   :  { %v371_v36 = vpop.eup %370 }
  0xc8   :  { %v166_v37 = vadd.f32 1.0, %v371_v36 }
  0xca   :  { %v168_v39 = vmul.f32 0.5, %v166_v37 }
  0xcc   :  { %v170_v41 = vmul.f32 %v168_v39, %v151_v27 }
  0xce   :  { %v171_v42 = vpack.c.bf16 %v170_v41, %v169_v40 }
  0xd0   :  { %248 = vmatmul.bf16.vlgmr.msra.gmra.mxu1 %v171_v42 }
 0x14d   :  { %v249_v44 = vpop.f32.mrf.mxu1 }
 0x14e   :  { %v250_v45 = vadd.f32 %v367_v43, %v249_v44 }
 0x150   :  { %v254_v46 = vadd.f32 %v250_v45, %v68_v8 }
 0x152   :  { %256 = vst [vmem:[#allocation8] sm:$0xff] %v254_v46 }
 0x155   :  { %v251_v47 = vpop.f32.mrf.mxu1 }
 0x156   :  { %v252_v48 = vadd.f32 %v367_v43, %v251_v47 }
 0x158   :  { %v255_v49 = vadd.f32 %v252_v48, %v69_v9 }
 0x15a   :  { %257 = vst [vmem:[#allocation8 + $0x8] sm:$0xff] %v255_v49 }
 0x15b   :  { %270 = dma.vmem_to_hbm [thread:$0]  %s263_s13, 256, %s265_s16, [#allocation4], %s478_s30, %s478_s30, %s479_s6  }
 0x15c   :  { %472 = dma.done.wait [#allocation4], 256  }
 0x15d   :  { %473 = vsyncadd [#allocation4], 4294967040 }
 0x15e   :  { %275 = vsyncpa [#allocation3], 1 }
 0x15f   :  { %276 = vsyncpa [#allocation6], 1 }
 0x160   :  { %277 = vsyncpa [#allocation4], 1 }

</bundles_post_ra>
